<compile_context>
chip_gen: v5e
topology: v5e:2x2
jax: 0.10.0
libtpu: 0.0.40
codegen_flags: <defaults>
</compile_context>

<pallas_src>
import functools
import math

import jax
import jax.numpy as jnp
from jax.experimental import pallas as pl
from jax.experimental.pallas import tpu as pltpu

# ----------------------------- problem sizes ------------------------------
LATENT_DIM = 8      # args.latent_dim  (D)
HIDDEN_DIM = 32     # hidden width of the drift / diffusion MLPs (H)
N_CELLS = 16        # batch of cells   (N)
N_TIMES = 6         # len(t)           (T)
TRAIN_DT = 0.1      # args.train_dt


# ------------------------------ Pallas kernel ------------------------------
def _sde_kernel(
    # inputs
    w1_ref,           # VMEM [D+T-1, 3H]   rows 0:D fused first-layer x-weights,
                      #                    rows D:  per-step (t_k*w1_t + b1)
    w2_ref,           # VMEM [2, 3H+8, D]  [0]=drift second layer (+bias row 3H),
                      #                    [1]=diffusion second layer (+bias row 3H)
    xn_ref,           # VMEM [T, N, D]     row 0 = x0, rows 1..T-1 = Brownian draws
    # outputs
    xs_ref,           # VMEM [T, N, D]     latent trajectory
    e_ref,            # VMEM [T, N, 1]     accumulated drift energy
    *,
    num_steps: int, d: int, h3: int, dt: float, sqdt: float,
):
    n = xs_ref.shape[1]

    # ---- one-time prologue: load packed weights, slice (sublane-aligned) ----
    w1_all = w1_ref[...]                           # [D+T-1, 3H]
    w1x = w1_all[0:d, :]                           # [D, 3H]
    w2_drift = w2_ref[0]                           # [3H+8, D]
    w2_diff = w2_ref[1]                            # [3H+8, D]
    w2d, b2d = w2_drift[0:h3, :], w2_drift[h3:h3 + 1, :]   # [3H,D], [1,D]
    w2g, b2g = w2_diff[0:h3, :], w2_diff[h3:h3 + 1, :]     # [3H,D], [1,D]

    x = xn_ref[0]                                  # [N, D]
    e = jnp.zeros((n, 1), jnp.float32)

    # state at t[0]
    xs_ref[0] = x
    e_ref[0] = e

    # Fully unrolled Euler loop (num_steps is tiny); all indices static.
    for i in range(num_steps):
        aff = w1_all[d + i:d + i + 1, :]           # [1, 3H] ready to broadcast

        # fused first layer: the three sub-nets share one matmul
        h = jnp.tanh(
            jnp.dot(x, w1x, preferred_element_type=jnp.float32) + aff)  # [N, 3H]

        # two independent second-layer dots -> both results lane-aligned 0:D
        drift = jnp.dot(h, w2d, preferred_element_type=jnp.float32) + b2d        # [N, D]
        diffu = jax.nn.sigmoid(
            jnp.dot(h, w2g, preferred_element_type=jnp.float32) + b2g)           # [N, D]

        x = x + drift * dt + diffu * (sqdt * xn_ref[i + 1])
        e = e + jnp.sum(drift * drift, axis=1, keepdims=True) * dt

        xs_ref[i + 1] = x                          # lane-aligned [N, D] store
        e_ref[i + 1] = e                           # lane-0 [N, 1] store (no rotate)


# ------------------------------ JAX wrapper --------------------------------
def multicnet_forward(t, x0, params, noise, dt=TRAIN_DT):
    """Integrates the SDE; returns the whole sequence [T, N, D+1].

    t:      [T]            time grid (spacing must equal `dt`, see TODO)
    x0:     [N, D]         initial latent states
    params: 3 tuples (w1[D+1,H], b1[1,H], w2[H,D], b2[1,D])
    noise:  [T-1, N, D]    standard-normal Brownian increment draws
    dt:     python float   train_dt (baked into the kernel as a constant)
    """
    T = t.shape[0]
    N, D = x0.shape
    (w1_i, b1_i, w2_i, b2_i), (w1_a, b1_a, w2_a, b2_a), (w1_g, b1_g, w2_g, b2_g) = params
    H = w1_i.shape[1]
    H3 = 3 * H
    dt = float(dt)
    sqdt = math.sqrt(dt)

    # ---- pack operands once in the wrapper (layout plumbing, not compute) ----
    # first layer: split off the time row, fuse the three nets column-wise, and
    # append the per-step time-affine rows so w1 ships as ONE VMEM buffer.
    w1x = jnp.concatenate([w1_i[:D], w1_a[:D], w1_g[:D]], axis=1)        # [D, 3H]
    w1t = jnp.concatenate([w1_i[D], w1_a[D], w1_g[D]], axis=0)           # [3H]
    b1f = jnp.concatenate([b1_i[0], b1_a[0], b1_g[0]], axis=0)           # [3H]
    step_aff = t[:-1, None] * w1t[None, :] + b1f[None, :]                # [T-1, 3H]
    w1_packed = jnp.concatenate([w1x, step_aff], axis=0)                 # [D+T-1, 3H]

    # second layer: drift (inter+intra) and diffusion stacked on a leading axis,
    # bias as the row right after the weights, zero-padded to a sublane boundary.
    zh = jnp.zeros((H, D), jnp.float32)
    pad = jnp.zeros((7, D), jnp.float32)
    w2_drift_stack = jnp.concatenate([w2_i, w2_a, zh, b2_i + b2_a, pad], axis=0)       # [3H+8, D]
    w2_diff_stack = jnp.concatenate([zh, zh, w2_g, b2_g, pad], axis=0)                 # [3H+8, D]
    w2_packed = jnp.stack([w2_drift_stack, w2_diff_stack], axis=0)                     # [2, 3H+8, D]

    # x0 rides as row 0 of the noise buffer -> single DMA for all state inputs.
    x0_and_noise = jnp.concatenate([x0[None].astype(jnp.float32),
                                    noise.astype(jnp.float32)], axis=0)  # [T, N, D]

    kernel = functools.partial(_sde_kernel, num_steps=T - 1, d=D, h3=H3,
                               dt=dt, sqdt=sqdt)

    vmem = pl.BlockSpec(memory_space=pltpu.MemorySpace.VMEM)

    flops = 2 * (T - 1) * N * (D * H3 + 2 * H3 * D)
    transcendentals = (T - 1) * N * (H3 + D)
    bytes_accessed = 4 * int(w1_packed.size + w2_packed.size + x0_and_noise.size
                             + T * N * D + T * N)

    xs, energy = pl.pallas_call(
        kernel,
        out_shape=(jax.ShapeDtypeStruct((T, N, D), jnp.float32),
                   jax.ShapeDtypeStruct((T, N, 1), jnp.float32)),
        in_specs=[vmem, vmem, vmem],
        out_specs=(vmem, vmem),
        cost_estimate=pl.CostEstimate(flops=flops,
                                      transcendentals=transcendentals,
                                      bytes_accessed=bytes_accessed),
    )(w1_packed, w2_packed, x0_and_noise)

    # lane-aligned slabs from the kernel; stitch the (D+1)-wide state here.
    return jnp.concatenate([xs, energy], axis=-1)                        # [T, N, D+1]


# --------------------------- pure-JAX reference -----------------------------
def multicnet_reference(t, x0, params, noise):
    p_inter, p_intra, p_diff = params
    N, D = x0.shape

    def mlp(p, tk, x):
        w1, b1, w2, b2 = p
        h = jnp.tanh(x @ w1[:-1] + tk * w1[-1][None, :] + b1)
        return h @ w2 + b2

    x = x0
    e = jnp.zeros((N, 1), x0.dtype)
    seq = [jnp.concatenate([x, e], axis=1)]
    for k in range(t.shape[0] - 1):
        dt = t[k + 1] - t[k]
        drift = mlp(p_inter, t[k], x) + mlp(p_intra, t[k], x)
        diffu = jax.nn.sigmoid(mlp(p_diff, t[k], x))
        x = x + drift * dt + diffu * jnp.sqrt(dt) * noise[k]
        e = e + jnp.sum(drift * drift, axis=1, keepdims=True) * dt
        seq.append(jnp.concatenate([x, e], axis=1))
    return jnp.stack(seq, axis=0)


# --------------------------- deterministic params --------------------------
def init_params(key, d=LATENT_DIM, h=HIDDEN_DIM):
    """Three MLPs (Drift_inter, Drift_intra, Diffusion):
       Linear(d+1 -> h) -> tanh -> Linear(h -> d)."""
    nets = []
    for _ in range(3):
        k1, k2, key = jax.random.split(key, 3)
        w1 = 0.2 * jax.random.normal(k1, (d + 1, h), jnp.float32)
        b1 = jnp.zeros((1, h), jnp.float32)
        w2 = 0.2 * jax.random.normal(k2, (h, d), jnp.float32)
        b2 = jnp.zeros((1, d), jnp.float32)
        nets.append((w1, b1, w2, b2))
    return nets


# --------------------------------- main -------------------------------------
if __name__ == "__main__":
    key = jax.random.PRNGKey(0)
    k_params, k_x0, k_noise = jax.random.split(key, 3)

    params = init_params(k_params)

    x0 = jax.random.normal(k_x0, (N_CELLS, LATENT_DIM), jnp.float32)
    t = jnp.arange(N_TIMES, dtype=jnp.float32) * TRAIN_DT                  # [T]
    noise = jax.random.normal(
        k_noise, (N_TIMES - 1, N_CELLS, LATENT_DIM), jnp.float32)          # [T-1,N,D]

    seq = multicnet_forward(t, x0, params, noise, dt=TRAIN_DT)             # [T,N,D+1]
    jax.block_until_ready(seq)

    ref = multicnet_reference(t, x0, params, noise)

    assert seq.shape == (N_TIMES, N_CELLS, LATENT_DIM + 1)
    assert bool(jnp.all(jnp.isfinite(seq)))
    # energy column integrates ||drift||^2 >= 0 -> monotone non-decreasing
    assert bool(jnp.all(seq[1:, :, -1] >= seq[:-1, :, -1] - 1e-5))
    # matches the pure-JAX reference (same fused math, different packing)
    assert bool(jnp.allclose(seq, ref, atol=1e-3, rtol=1e-3))

    print("KERNEL_OK")
</pallas_src>

<mosaic_0001>
module attributes {stable_mosaic.version = 11 : i64} {
  func.func @_sde_kernel(%arg0: memref<13x96xf32, #tpu.memory_space<vmem>>, %arg1: memref<2x104x8xf32, #tpu.memory_space<vmem>>, %arg2: memref<6x16x8xf32, #tpu.memory_space<vmem>>, %arg3: memref<6x16x8xf32, #tpu.memory_space<vmem>>, %arg4: memref<6x16x1xf32, #tpu.memory_space<vmem>>) attributes {dimension_semantics = [], scalar_prefetch = 0 : i64, scratch_operands = 0 : i64, tpu.core_type = #tpu.core_type<tc>} {
    %c0 = arith.constant 0 : index
    %c0_0 = arith.constant 0 : index
    %0 = vector.load %arg0[%c0, %c0_0] : memref<13x96xf32, #tpu.memory_space<vmem>>, vector<13x96xf32>
    %1 = vector.extract_strided_slice %0 {offsets = [0, 0], sizes = [8, 96], strides = [1, 1]} : vector<13x96xf32> to vector<8x96xf32>
    %c0_1 = arith.constant 0 : index
    %c0_2 = arith.constant 0 : index
    %c0_3 = arith.constant 0 : index
    %2 = vector.load %arg1[%c0_1, %c0_2, %c0_3] : memref<2x104x8xf32, #tpu.memory_space<vmem>>, vector<1x104x8xf32>
    %3 = vector.shape_cast %2 : vector<1x104x8xf32> to vector<104x8xf32>
    %c1 = arith.constant 1 : index
    %c0_4 = arith.constant 0 : index
    %c0_5 = arith.constant 0 : index
    %4 = vector.load %arg1[%c1, %c0_4, %c0_5] : memref<2x104x8xf32, #tpu.memory_space<vmem>>, vector<1x104x8xf32>
    %5 = vector.shape_cast %4 : vector<1x104x8xf32> to vector<104x8xf32>
    %6 = vector.extract_strided_slice %3 {offsets = [0, 0], sizes = [96, 8], strides = [1, 1]} : vector<104x8xf32> to vector<96x8xf32>
    %7 = vector.extract_strided_slice %3 {offsets = [96, 0], sizes = [1, 8], strides = [1, 1]} : vector<104x8xf32> to vector<1x8xf32>
    %8 = vector.extract_strided_slice %5 {offsets = [0, 0], sizes = [96, 8], strides = [1, 1]} : vector<104x8xf32> to vector<96x8xf32>
    %9 = vector.extract_strided_slice %5 {offsets = [96, 0], sizes = [1, 8], strides = [1, 1]} : vector<104x8xf32> to vector<1x8xf32>
    %c0_6 = arith.constant 0 : index
    %c0_7 = arith.constant 0 : index
    %c0_8 = arith.constant 0 : index
    %10 = vector.load %arg2[%c0_6, %c0_7, %c0_8] : memref<6x16x8xf32, #tpu.memory_space<vmem>>, vector<1x16x8xf32>
    %11 = vector.shape_cast %10 : vector<1x16x8xf32> to vector<16x8xf32>
    %cst = arith.constant 0.000000e+00 : f32
    %12 = vector.broadcast %cst : f32 to vector<16x1xf32>
    %c0_9 = arith.constant 0 : index
    %c0_10 = arith.constant 0 : index
    %c0_11 = arith.constant 0 : index
    %13 = vector.load %arg3[%c0_9, %c0_10, %c0_11] : memref<6x16x8xf32, #tpu.memory_space<vmem>>, vector<1x16x8xf32>
    %14 = vector.shape_cast %13 : vector<1x16x8xf32> to vector<16x8xf32>
    %15 = vector.shape_cast %11 : vector<16x8xf32> to vector<1x16x8xf32>
    tpu.vector_store %arg3[%c0_9, %c0_10, %c0_11], %15 {strides = array<i32>} : memref<6x16x8xf32, #tpu.memory_space<vmem>>, vector<1x16x8xf32>,
    %c0_12 = arith.constant 0 : index
    %c0_13 = arith.constant 0 : index
    %c0_14 = arith.constant 0 : index
    %16 = vector.load %arg4[%c0_12, %c0_13, %c0_14] : memref<6x16x1xf32, #tpu.memory_space<vmem>>, vector<1x16x1xf32>
    %17 = vector.shape_cast %16 : vector<1x16x1xf32> to vector<16x1xf32>
    %18 = vector.shape_cast %12 : vector<16x1xf32> to vector<1x16x1xf32>
    tpu.vector_store %arg4[%c0_12, %c0_13, %c0_14], %18 {strides = array<i32>} : memref<6x16x1xf32, #tpu.memory_space<vmem>>, vector<1x16x1xf32>,
    %19 = vector.extract_strided_slice %0 {offsets = [8, 0], sizes = [1, 96], strides = [1, 1]} : vector<13x96xf32> to vector<1x96xf32>
    %cst_15 = arith.constant dense<0.000000e+00> : vector<16x96xf32>
    %20 = tpu.matmul %11, %1, %cst_15 {dimension_numbers = #tpu.dot_dimension_numbers<[1], [0], [0], [1], [0, 0, 1, 1], [], []>} : vector<16x8xf32>, vector<8x96xf32>, vector<16x96xf32> -> vector<16x96xf32>
    %21 = vector.broadcast %19 : vector<1x96xf32> to vector<16x96xf32>
    %22 = arith.addf %20, %21 : vector<16x96xf32>
    %23 = math.tanh %22 : vector<16x96xf32>
    %cst_16 = arith.constant dense<0.000000e+00> : vector<16x8xf32>
    %24 = tpu.matmul %23, %6, %cst_16 {dimension_numbers = #tpu.dot_dimension_numbers<[1], [0], [0], [1], [0, 0, 1, 1], [], []>} : vector<16x96xf32>, vector<96x8xf32>, vector<16x8xf32> -> vector<16x8xf32>
    %25 = vector.broadcast %7 : vector<1x8xf32> to vector<16x8xf32>
    %26 = arith.addf %24, %25 : vector<16x8xf32>
    %cst_17 = arith.constant dense<0.000000e+00> : vector<16x8xf32>
    %27 = tpu.matmul %23, %8, %cst_17 {dimension_numbers = #tpu.dot_dimension_numbers<[1], [0], [0], [1], [0, 0, 1, 1], [], []>} : vector<16x96xf32>, vector<96x8xf32>, vector<16x8xf32> -> vector<16x8xf32>
    %28 = vector.broadcast %9 : vector<1x8xf32> to vector<16x8xf32>
    %29 = arith.addf %27, %28 : vector<16x8xf32>
    %30 = arith.negf %29 : vector<16x8xf32>
    %31 = math.exp %30 : vector<16x8xf32>
    %cst_18 = arith.constant 1.000000e+00 : f32
    %32 = vector.broadcast %cst_18 : f32 to vector<16x8xf32>
    %33 = arith.addf %32, %31 : vector<16x8xf32>
    %34 = arith.divf %32, %33 : vector<16x8xf32>
    %cst_19 = arith.constant 1.000000e-01 : f32
    %35 = vector.broadcast %cst_19 : f32 to vector<16x8xf32>
    %36 = arith.mulf %26, %35 : vector<16x8xf32>
    %37 = arith.addf %11, %36 : vector<16x8xf32>
    %c1_20 = arith.constant 1 : index
    %c0_21 = arith.constant 0 : index
    %c0_22 = arith.constant 0 : index
    %38 = vector.load %arg2[%c1_20, %c0_21, %c0_22] : memref<6x16x8xf32, #tpu.memory_space<vmem>>, vector<1x16x8xf32>
    %39 = vector.shape_cast %38 : vector<1x16x8xf32> to vector<16x8xf32>
    %cst_23 = arith.constant 0.316227764 : f32
    %40 = vector.broadcast %cst_23 : f32 to vector<16x8xf32>
    %41 = arith.mulf %40, %39 : vector<16x8xf32>
    %42 = arith.mulf %34, %41 : vector<16x8xf32>
    %43 = arith.addf %37, %42 : vector<16x8xf32>
    %44 = arith.mulf %26, %26 : vector<16x8xf32>
    %cst_24 = arith.constant dense<0.000000e+00> : vector<16xf32>
    %45 = vector.multi_reduction <add>, %44, %cst_24 [1] : vector<16x8xf32> to vector<16xf32>
    %46 = vector.shape_cast %45 : vector<16xf32> to vector<16x1xf32>
    %cst_25 = arith.constant 1.000000e-01 : f32
    %47 = vector.broadcast %cst_25 : f32 to vector<16x1xf32>
    %48 = arith.mulf %46, %47 : vector<16x1xf32>
    %49 = arith.addf %12, %48 : vector<16x1xf32>
    %c1_26 = arith.constant 1 : index
    %c0_27 = arith.constant 0 : index
    %c0_28 = arith.constant 0 : index
    %50 = vector.load %arg3[%c1_26, %c0_27, %c0_28] : memref<6x16x8xf32, #tpu.memory_space<vmem>>, vector<1x16x8xf32>
    %51 = vector.shape_cast %50 : vector<1x16x8xf32> to vector<16x8xf32>
    %52 = vector.shape_cast %43 : vector<16x8xf32> to vector<1x16x8xf32>
    tpu.vector_store %arg3[%c1_26, %c0_27, %c0_28], %52 {strides = array<i32>} : memref<6x16x8xf32, #tpu.memory_space<vmem>>, vector<1x16x8xf32>,
    %c1_29 = arith.constant 1 : index
    %c0_30 = arith.constant 0 : index
    %c0_31 = arith.constant 0 : index
    %53 = vector.load %arg4[%c1_29, %c0_30, %c0_31] : memref<6x16x1xf32, #tpu.memory_space<vmem>>, vector<1x16x1xf32>
    %54 = vector.shape_cast %53 : vector<1x16x1xf32> to vector<16x1xf32>
    %55 = vector.shape_cast %49 : vector<16x1xf32> to vector<1x16x1xf32>
    tpu.vector_store %arg4[%c1_29, %c0_30, %c0_31], %55 {strides = array<i32>} : memref<6x16x1xf32, #tpu.memory_space<vmem>>, vector<1x16x1xf32>,
    %56 = vector.extract_strided_slice %0 {offsets = [9, 0], sizes = [1, 96], strides = [1, 1]} : vector<13x96xf32> to vector<1x96xf32>
    %cst_32 = arith.constant dense<0.000000e+00> : vector<16x96xf32>
    %57 = tpu.matmul %43, %1, %cst_32 {dimension_numbers = #tpu.dot_dimension_numbers<[1], [0], [0], [1], [0, 0, 1, 1], [], []>} : vector<16x8xf32>, vector<8x96xf32>, vector<16x96xf32> -> vector<16x96xf32>
    %58 = vector.broadcast %56 : vector<1x96xf32> to vector<16x96xf32>
    %59 = arith.addf %57, %58 : vector<16x96xf32>
    %60 = math.tanh %59 : vector<16x96xf32>
    %cst_33 = arith.constant dense<0.000000e+00> : vector<16x8xf32>
    %61 = tpu.matmul %60, %6, %cst_33 {dimension_numbers = #tpu.dot_dimension_numbers<[1], [0], [0], [1], [0, 0, 1, 1], [], []>} : vector<16x96xf32>, vector<96x8xf32>, vector<16x8xf32> -> vector<16x8xf32>
    %62 = vector.broadcast %7 : vector<1x8xf32> to vector<16x8xf32>
    %63 = arith.addf %61, %62 : vector<16x8xf32>
    %cst_34 = arith.constant dense<0.000000e+00> : vector<16x8xf32>
    %64 = tpu.matmul %60, %8, %cst_34 {dimension_numbers = #tpu.dot_dimension_numbers<[1], [0], [0], [1], [0, 0, 1, 1], [], []>} : vector<16x96xf32>, vector<96x8xf32>, vector<16x8xf32> -> vector<16x8xf32>
    %65 = vector.broadcast %9 : vector<1x8xf32> to vector<16x8xf32>
    %66 = arith.addf %64, %65 : vector<16x8xf32>
    %67 = arith.negf %66 : vector<16x8xf32>
    %68 = math.exp %67 : vector<16x8xf32>
    %cst_35 = arith.constant 1.000000e+00 : f32
    %69 = vector.broadcast %cst_35 : f32 to vector<16x8xf32>
    %70 = arith.addf %69, %68 : vector<16x8xf32>
    %71 = arith.divf %69, %70 : vector<16x8xf32>
    %cst_36 = arith.constant 1.000000e-01 : f32
    %72 = vector.broadcast %cst_36 : f32 to vector<16x8xf32>
    %73 = arith.mulf %63, %72 : vector<16x8xf32>
    %74 = arith.addf %43, %73 : vector<16x8xf32>
    %c2 = arith.constant 2 : index
    %c0_37 = arith.constant 0 : index
    %c0_38 = arith.constant 0 : index
    %75 = vector.load %arg2[%c2, %c0_37, %c0_38] : memref<6x16x8xf32, #tpu.memory_space<vmem>>, vector<1x16x8xf32>
    %76 = vector.shape_cast %75 : vector<1x16x8xf32> to vector<16x8xf32>
    %cst_39 = arith.constant 0.316227764 : f32
    %77 = vector.broadcast %cst_39 : f32 to vector<16x8xf32>
    %78 = arith.mulf %77, %76 : vector<16x8xf32>
    %79 = arith.mulf %71, %78 : vector<16x8xf32>
    %80 = arith.addf %74, %79 : vector<16x8xf32>
    %81 = arith.mulf %63, %63 : vector<16x8xf32>
    %cst_40 = arith.constant dense<0.000000e+00> : vector<16xf32>
    %82 = vector.multi_reduction <add>, %81, %cst_40 [1] : vector<16x8xf32> to vector<16xf32>
    %83 = vector.shape_cast %82 : vector<16xf32> to vector<16x1xf32>
    %cst_41 = arith.constant 1.000000e-01 : f32
    %84 = vector.broadcast %cst_41 : f32 to vector<16x1xf32>
    %85 = arith.mulf %83, %84 : vector<16x1xf32>
    %86 = arith.addf %49, %85 : vector<16x1xf32>
    %c2_42 = arith.constant 2 : index
    %c0_43 = arith.constant 0 : index
    %c0_44 = arith.constant 0 : index
    %87 = vector.load %arg3[%c2_42, %c0_43, %c0_44] : memref<6x16x8xf32, #tpu.memory_space<vmem>>, vector<1x16x8xf32>
    %88 = vector.shape_cast %87 : vector<1x16x8xf32> to vector<16x8xf32>
    %89 = vector.shape_cast %80 : vector<16x8xf32> to vector<1x16x8xf32>
    tpu.vector_store %arg3[%c2_42, %c0_43, %c0_44], %89 {strides = array<i32>} : memref<6x16x8xf32, #tpu.memory_space<vmem>>, vector<1x16x8xf32>,
    %c2_45 = arith.constant 2 : index
    %c0_46 = arith.constant 0 : index
    %c0_47 = arith.constant 0 : index
    %90 = vector.load %arg4[%c2_45, %c0_46, %c0_47] : memref<6x16x1xf32, #tpu.memory_space<vmem>>, vector<1x16x1xf32>
    %91 = vector.shape_cast %90 : vector<1x16x1xf32> to vector<16x1xf32>
    %92 = vector.shape_cast %86 : vector<16x1xf32> to vector<1x16x1xf32>
    tpu.vector_store %arg4[%c2_45, %c0_46, %c0_47], %92 {strides = array<i32>} : memref<6x16x1xf32, #tpu.memory_space<vmem>>, vector<1x16x1xf32>,
    %93 = vector.extract_strided_slice %0 {offsets = [10, 0], sizes = [1, 96], strides = [1, 1]} : vector<13x96xf32> to vector<1x96xf32>
    %cst_48 = arith.constant dense<0.000000e+00> : vector<16x96xf32>
    %94 = tpu.matmul %80, %1, %cst_48 {dimension_numbers = #tpu.dot_dimension_numbers<[1], [0], [0], [1], [0, 0, 1, 1], [], []>} : vector<16x8xf32>, vector<8x96xf32>, vector<16x96xf32> -> vector<16x96xf32>
    %95 = vector.broadcast %93 : vector<1x96xf32> to vector<16x96xf32>
    %96 = arith.addf %94, %95 : vector<16x96xf32>
    %97 = math.tanh %96 : vector<16x96xf32>
    %cst_49 = arith.constant dense<0.000000e+00> : vector<16x8xf32>
    %98 = tpu.matmul %97, %6, %cst_49 {dimension_numbers = #tpu.dot_dimension_numbers<[1], [0], [0], [1], [0, 0, 1, 1], [], []>} : vector<16x96xf32>, vector<96x8xf32>, vector<16x8xf32> -> vector<16x8xf32>
    %99 = vector.broadcast %7 : vector<1x8xf32> to vector<16x8xf32>
    %100 = arith.addf %98, %99 : vector<16x8xf32>
    %cst_50 = arith.constant dense<0.000000e+00> : vector<16x8xf32>
    %101 = tpu.matmul %97, %8, %cst_50 {dimension_numbers = #tpu.dot_dimension_numbers<[1], [0], [0], [1], [0, 0, 1, 1], [], []>} : vector<16x96xf32>, vector<96x8xf32>, vector<16x8xf32> -> vector<16x8xf32>
    %102 = vector.broadcast %9 : vector<1x8xf32> to vector<16x8xf32>
    %103 = arith.addf %101, %102 : vector<16x8xf32>
    %104 = arith.negf %103 : vector<16x8xf32>
    %105 = math.exp %104 : vector<16x8xf32>
    %cst_51 = arith.constant 1.000000e+00 : f32
    %106 = vector.broadcast %cst_51 : f32 to vector<16x8xf32>
    %107 = arith.addf %106, %105 : vector<16x8xf32>
    %108 = arith.divf %106, %107 : vector<16x8xf32>
    %cst_52 = arith.constant 1.000000e-01 : f32
    %109 = vector.broadcast %cst_52 : f32 to vector<16x8xf32>
    %110 = arith.mulf %100, %109 : vector<16x8xf32>
    %111 = arith.addf %80, %110 : vector<16x8xf32>
    %c3 = arith.constant 3 : index
    %c0_53 = arith.constant 0 : index
    %c0_54 = arith.constant 0 : index
    %112 = vector.load %arg2[%c3, %c0_53, %c0_54] : memref<6x16x8xf32, #tpu.memory_space<vmem>>, vector<1x16x8xf32>
    %113 = vector.shape_cast %112 : vector<1x16x8xf32> to vector<16x8xf32>
    %cst_55 = arith.constant 0.316227764 : f32
    %114 = vector.broadcast %cst_55 : f32 to vector<16x8xf32>
    %115 = arith.mulf %114, %113 : vector<16x8xf32>
    %116 = arith.mulf %108, %115 : vector<16x8xf32>
    %117 = arith.addf %111, %116 : vector<16x8xf32>
    %118 = arith.mulf %100, %100 : vector<16x8xf32>
    %cst_56 = arith.constant dense<0.000000e+00> : vector<16xf32>
    %119 = vector.multi_reduction <add>, %118, %cst_56 [1] : vector<16x8xf32> to vector<16xf32>
    %120 = vector.shape_cast %119 : vector<16xf32> to vector<16x1xf32>
    %cst_57 = arith.constant 1.000000e-01 : f32
    %121 = vector.broadcast %cst_57 : f32 to vector<16x1xf32>
    %122 = arith.mulf %120, %121 : vector<16x1xf32>
    %123 = arith.addf %86, %122 : vector<16x1xf32>
    %c3_58 = arith.constant 3 : index
    %c0_59 = arith.constant 0 : index
    %c0_60 = arith.constant 0 : index
    %124 = vector.load %arg3[%c3_58, %c0_59, %c0_60] : memref<6x16x8xf32, #tpu.memory_space<vmem>>, vector<1x16x8xf32>
    %125 = vector.shape_cast %124 : vector<1x16x8xf32> to vector<16x8xf32>
    %126 = vector.shape_cast %117 : vector<16x8xf32> to vector<1x16x8xf32>
    tpu.vector_store %arg3[%c3_58, %c0_59, %c0_60], %126 {strides = array<i32>} : memref<6x16x8xf32, #tpu.memory_space<vmem>>, vector<1x16x8xf32>,
    %c3_61 = arith.constant 3 : index
    %c0_62 = arith.constant 0 : index
    %c0_63 = arith.constant 0 : index
    %127 = vector.load %arg4[%c3_61, %c0_62, %c0_63] : memref<6x16x1xf32, #tpu.memory_space<vmem>>, vector<1x16x1xf32>
    %128 = vector.shape_cast %127 : vector<1x16x1xf32> to vector<16x1xf32>
    %129 = vector.shape_cast %123 : vector<16x1xf32> to vector<1x16x1xf32>
    tpu.vector_store %arg4[%c3_61, %c0_62, %c0_63], %129 {strides = array<i32>} : memref<6x16x1xf32, #tpu.memory_space<vmem>>, vector<1x16x1xf32>,
    %130 = vector.extract_strided_slice %0 {offsets = [11, 0], sizes = [1, 96], strides = [1, 1]} : vector<13x96xf32> to vector<1x96xf32>
    %cst_64 = arith.constant dense<0.000000e+00> : vector<16x96xf32>
    %131 = tpu.matmul %117, %1, %cst_64 {dimension_numbers = #tpu.dot_dimension_numbers<[1], [0], [0], [1], [0, 0, 1, 1], [], []>} : vector<16x8xf32>, vector<8x96xf32>, vector<16x96xf32> -> vector<16x96xf32>
    %132 = vector.broadcast %130 : vector<1x96xf32> to vector<16x96xf32>
    %133 = arith.addf %131, %132 : vector<16x96xf32>
    %134 = math.tanh %133 : vector<16x96xf32>
    %cst_65 = arith.constant dense<0.000000e+00> : vector<16x8xf32>
    %135 = tpu.matmul %134, %6, %cst_65 {dimension_numbers = #tpu.dot_dimension_numbers<[1], [0], [0], [1], [0, 0, 1, 1], [], []>} : vector<16x96xf32>, vector<96x8xf32>, vector<16x8xf32> -> vector<16x8xf32>
    %136 = vector.broadcast %7 : vector<1x8xf32> to vector<16x8xf32>
    %137 = arith.addf %135, %136 : vector<16x8xf32>
    %cst_66 = arith.constant dense<0.000000e+00> : vector<16x8xf32>
    %138 = tpu.matmul %134, %8, %cst_66 {dimension_numbers = #tpu.dot_dimension_numbers<[1], [0], [0], [1], [0, 0, 1, 1], [], []>} : vector<16x96xf32>, vector<96x8xf32>, vector<16x8xf32> -> vector<16x8xf32>
    %139 = vector.broadcast %9 : vector<1x8xf32> to vector<16x8xf32>
    %140 = arith.addf %138, %139 : vector<16x8xf32>
    %141 = arith.negf %140 : vector<16x8xf32>
    %142 = math.exp %141 : vector<16x8xf32>
    %cst_67 = arith.constant 1.000000e+00 : f32
    %143 = vector.broadcast %cst_67 : f32 to vector<16x8xf32>
    %144 = arith.addf %143, %142 : vector<16x8xf32>
    %145 = arith.divf %143, %144 : vector<16x8xf32>
    %cst_68 = arith.constant 1.000000e-01 : f32
    %146 = vector.broadcast %cst_68 : f32 to vector<16x8xf32>
    %147 = arith.mulf %137, %146 : vector<16x8xf32>
    %148 = arith.addf %117, %147 : vector<16x8xf32>
    %c4 = arith.constant 4 : index
    %c0_69 = arith.constant 0 : index
    %c0_70 = arith.constant 0 : index
    %149 = vector.load %arg2[%c4, %c0_69, %c0_70] : memref<6x16x8xf32, #tpu.memory_space<vmem>>, vector<1x16x8xf32>
    %150 = vector.shape_cast %149 : vector<1x16x8xf32> to vector<16x8xf32>
    %cst_71 = arith.constant 0.316227764 : f32
    %151 = vector.broadcast %cst_71 : f32 to vector<16x8xf32>
    %152 = arith.mulf %151, %150 : vector<16x8xf32>
    %153 = arith.mulf %145, %152 : vector<16x8xf32>
    %154 = arith.addf %148, %153 : vector<16x8xf32>
    %155 = arith.mulf %137, %137 : vector<16x8xf32>
    %cst_72 = arith.constant dense<0.000000e+00> : vector<16xf32>
    %156 = vector.multi_reduction <add>, %155, %cst_72 [1] : vector<16x8xf32> to vector<16xf32>
    %157 = vector.shape_cast %156 : vector<16xf32> to vector<16x1xf32>
    %cst_73 = arith.constant 1.000000e-01 : f32
    %158 = vector.broadcast %cst_73 : f32 to vector<16x1xf32>
    %159 = arith.mulf %157, %158 : vector<16x1xf32>
    %160 = arith.addf %123, %159 : vector<16x1xf32>
    %c4_74 = arith.constant 4 : index
    %c0_75 = arith.constant 0 : index
    %c0_76 = arith.constant 0 : index
    %161 = vector.load %arg3[%c4_74, %c0_75, %c0_76] : memref<6x16x8xf32, #tpu.memory_space<vmem>>, vector<1x16x8xf32>
    %162 = vector.shape_cast %161 : vector<1x16x8xf32> to vector<16x8xf32>
    %163 = vector.shape_cast %154 : vector<16x8xf32> to vector<1x16x8xf32>
    tpu.vector_store %arg3[%c4_74, %c0_75, %c0_76], %163 {strides = array<i32>} : memref<6x16x8xf32, #tpu.memory_space<vmem>>, vector<1x16x8xf32>,
    %c4_77 = arith.constant 4 : index
    %c0_78 = arith.constant 0 : index
    %c0_79 = arith.constant 0 : index
    %164 = vector.load %arg4[%c4_77, %c0_78, %c0_79] : memref<6x16x1xf32, #tpu.memory_space<vmem>>, vector<1x16x1xf32>
    %165 = vector.shape_cast %164 : vector<1x16x1xf32> to vector<16x1xf32>
    %166 = vector.shape_cast %160 : vector<16x1xf32> to vector<1x16x1xf32>
    tpu.vector_store %arg4[%c4_77, %c0_78, %c0_79], %166 {strides = array<i32>} : memref<6x16x1xf32, #tpu.memory_space<vmem>>, vector<1x16x1xf32>,
    %167 = vector.extract_strided_slice %0 {offsets = [12, 0], sizes = [1, 96], strides = [1, 1]} : vector<13x96xf32> to vector<1x96xf32>
    %cst_80 = arith.constant dense<0.000000e+00> : vector<16x96xf32>
    %168 = tpu.matmul %154, %1, %cst_80 {dimension_numbers = #tpu.dot_dimension_numbers<[1], [0], [0], [1], [0, 0, 1, 1], [], []>} : vector<16x8xf32>, vector<8x96xf32>, vector<16x96xf32> -> vector<16x96xf32>
    %169 = vector.broadcast %167 : vector<1x96xf32> to vector<16x96xf32>
    %170 = arith.addf %168, %169 : vector<16x96xf32>
    %171 = math.tanh %170 : vector<16x96xf32>
    %cst_81 = arith.constant dense<0.000000e+00> : vector<16x8xf32>
    %172 = tpu.matmul %171, %6, %cst_81 {dimension_numbers = #tpu.dot_dimension_numbers<[1], [0], [0], [1], [0, 0, 1, 1], [], []>} : vector<16x96xf32>, vector<96x8xf32>, vector<16x8xf32> -> vector<16x8xf32>
    %173 = vector.broadcast %7 : vector<1x8xf32> to vector<16x8xf32>
    %174 = arith.addf %172, %173 : vector<16x8xf32>
    %cst_82 = arith.constant dense<0.000000e+00> : vector<16x8xf32>
    %175 = tpu.matmul %171, %8, %cst_82 {dimension_numbers = #tpu.dot_dimension_numbers<[1], [0], [0], [1], [0, 0, 1, 1], [], []>} : vector<16x96xf32>, vector<96x8xf32>, vector<16x8xf32> -> vector<16x8xf32>
    %176 = vector.broadcast %9 : vector<1x8xf32> to vector<16x8xf32>
    %177 = arith.addf %175, %176 : vector<16x8xf32>
    %178 = arith.negf %177 : vector<16x8xf32>
    %179 = math.exp %178 : vector<16x8xf32>
    %cst_83 = arith.constant 1.000000e+00 : f32
    %180 = vector.broadcast %cst_83 : f32 to vector<16x8xf32>
    %181 = arith.addf %180, %179 : vector<16x8xf32>
    %182 = arith.divf %180, %181 : vector<16x8xf32>
    %cst_84 = arith.constant 1.000000e-01 : f32
    %183 = vector.broadcast %cst_84 : f32 to vector<16x8xf32>
    %184 = arith.mulf %174, %183 : vector<16x8xf32>
    %185 = arith.addf %154, %184 : vector<16x8xf32>
    %c5 = arith.constant 5 : index
    %c0_85 = arith.constant 0 : index
    %c0_86 = arith.constant 0 : index
    %186 = vector.load %arg2[%c5, %c0_85, %c0_86] : memref<6x16x8xf32, #tpu.memory_space<vmem>>, vector<1x16x8xf32>
    %187 = vector.shape_cast %186 : vector<1x16x8xf32> to vector<16x8xf32>
    %cst_87 = arith.constant 0.316227764 : f32
    %188 = vector.broadcast %cst_87 : f32 to vector<16x8xf32>
    %189 = arith.mulf %188, %187 : vector<16x8xf32>
    %190 = arith.mulf %182, %189 : vector<16x8xf32>
    %191 = arith.addf %185, %190 : vector<16x8xf32>
    %192 = arith.mulf %174, %174 : vector<16x8xf32>
    %cst_88 = arith.constant dense<0.000000e+00> : vector<16xf32>
    %193 = vector.multi_reduction <add>, %192, %cst_88 [1] : vector<16x8xf32> to vector<16xf32>
    %194 = vector.shape_cast %193 : vector<16xf32> to vector<16x1xf32>
    %cst_89 = arith.constant 1.000000e-01 : f32
    %195 = vector.broadcast %cst_89 : f32 to vector<16x1xf32>
    %196 = arith.mulf %194, %195 : vector<16x1xf32>
    %197 = arith.addf %160, %196 : vector<16x1xf32>
    %c5_90 = arith.constant 5 : index
    %c0_91 = arith.constant 0 : index
    %c0_92 = arith.constant 0 : index
    %198 = vector.load %arg3[%c5_90, %c0_91, %c0_92] : memref<6x16x8xf32, #tpu.memory_space<vmem>>, vector<1x16x8xf32>
    %199 = vector.shape_cast %198 : vector<1x16x8xf32> to vector<16x8xf32>
    %200 = vector.shape_cast %191 : vector<16x8xf32> to vector<1x16x8xf32>
    tpu.vector_store %arg3[%c5_90, %c0_91, %c0_92], %200 {strides = array<i32>} : memref<6x16x8xf32, #tpu.memory_space<vmem>>, vector<1x16x8xf32>,
    %c5_93 = arith.constant 5 : index
    %c0_94 = arith.constant 0 : index
    %c0_95 = arith.constant 0 : index
    %201 = vector.load %arg4[%c5_93, %c0_94, %c0_95] : memref<6x16x1xf32, #tpu.memory_space<vmem>>, vector<1x16x1xf32>
    %202 = vector.shape_cast %201 : vector<1x16x1xf32> to vector<16x1xf32>
    %203 = vector.shape_cast %197 : vector<16x1xf32> to vector<1x16x1xf32>
    tpu.vector_store %arg4[%c5_93, %c0_94, %c0_95], %203 {strides = array<i32>} : memref<6x16x1xf32, #tpu.memory_space<vmem>>, vector<1x16x1xf32>,
    return
  }
}

</mosaic_0001>

<bundles_post_ra>
// kernel: tpu_custom_call.1
= control target key start
LH: loop header
LB: loop body
LE: loop exit
PB: predicated region body
PF: predicated region fallthrough
CT: control target
= control target key end

     0   :  { %vm47_vm0 = vcmask 64512   ;;  %vm86_vm1 = vcmask 785408   ;;  %vm50_vm2 = vcmask 7168   ;;  %v974_v55 = vmov 0.0   ;;  %s1545_s0 = inlined_call_operand.vmem [shape: f32[13,96], index: 0, kind: input, shape index: {}]   ;;  %s1546_s2 = inlined_call_operand.vmem [shape: f32[6,16,8], index: 2, kind: input, shape index: {}]   ;;  %s1547_s1 = inlined_call_operand.vmem [shape: f32[2,104,8], index: 1, kind: input, shape index: {}]   ;;  %s1548_s3 = inlined_call_operand.vmem [shape: f32[6,16,8], index: 3, kind: output, shape index: {0}]   ;;  %s1549_s4 = inlined_call_operand.vmem [shape: f32[6,16,1], index: 4, kind: output, shape index: {1}]  }
   0x1   :  { %v1003_v0 = vld [vmem:[%s1545_s0] sm:$0xff]  ;;  %v1013_v2 = vld [vmem:[%s1546_s2 + $0x8] sm:$0xff]  ;;  %v1024_v3 = vld [vmem:[%s1547_s1 + $0x58] sm:$0xff]  ;;  %51 = vst.msk [vmem:[%s1549_s4] sm:$0xff] %vm50_vm2, %v974_v55 }
   0x2   :  { %v1008_v1 = vld [vmem:[%s1546_s2] sm:$0xff]  ;;  %75 = vmatpush.msra.mxu0 %v1003_v0  ;;  %v1034_v5 = vld [vmem:[%s1547_s1 + $0x50] sm:$0xff]  ;;  %231 = vmatpush.msra.mxu3 %v1003_v0  ;;  %49 = vst.msk [vmem:[%s1548_s3 + $0x8] sm:$0xff] %vm47_vm0, %v1013_v2  ;;  %v1048_v6 = vld [vmem:[%s1547_s1 + $0xb8] sm:$0xff] }
   0x3   :  { %48 = vst.msk [vmem:[%s1548_s3] sm:$0xff] %vm47_vm0, %v1008_v1  ;;  %v1029_v4 = vld [vmem:[%s1547_s1 + $0xc0] sm:$0xff]  ;;  %842 = vmatmul.msk.f32.vlgmr.msra.gmra.mxu0 %vm47_vm0, %v1008_v1  ;;  %97 = vmatpush.msra.mxu1 %v1024_v3  ;;  %v1054_v7 = vld [vmem:[%s1547_s1 + $0x48] sm:$0xff]  ;;  %v1061_v8 = vld [vmem:[%s1547_s1 + $0xb0] sm:$0xff] }
   0x4   :  { %121 = vmatpush.msra.mxu2 %v1029_v4  ;;  %251 = vmatpush.msrb.mxu0 %v1024_v3  ;;  %v1068_v9 = vld [vmem:[%s1547_s1 + $0x40] sm:$0xff]  ;;  %v1075_v10 = vld [vmem:[%s1547_s1 + $0xa8] sm:$0xff]  ;;  %v1082_v11 = vld [vmem:[%s1547_s1 + $0x38] sm:$0xff]  ;;  %52 = vst.msk [vmem:[%s1549_s4 + $0x8] sm:$0xff] %vm50_vm2, %v974_v55 }
   0x5   :  { %98 = vmatpush.msra.mxu1 %v1034_v5  ;;  %274 = vmatpush.msrb.mxu3 %v1029_v4  ;;  %v1089_v12 = vld [vmem:[%s1547_s1 + $0xa0] sm:$0xff]  ;;  %v1096_v13 = vld [vmem:[%s1547_s1 + $0x30] sm:$0xff]  ;;  %v1105_v14 = vld [vmem:[%s1547_s1 + $0x98] sm:$0xff] }
   0x6   :  { %122 = vmatpush.msra.mxu2 %v1048_v6  ;;  %252 = vmatpush.msrb.mxu0 %v1034_v5  ;;  %v1111_v15 = vld [vmem:[%s1547_s1 + $0x28] sm:$0xff]  ;;  %v1118_v16 = vld [vmem:[%s1547_s1 + $0x90] sm:$0xff]  ;;  %v1132_v17 = vld [vmem:[%s1547_s1 + $0x20] sm:$0xff] }
   0x7   :  { %99 = vmatpush.msra.mxu1 %v1054_v7  ;;  %275 = vmatpush.msrb.mxu3 %v1048_v6  ;;  %v1137_v18 = vld [vmem:[%s1547_s1 + $0x88] sm:$0xff]  ;;  %v1144_v19 = vld [vmem:[%s1547_s1 + $0x18] sm:$0xff]  ;;  %v1149_v20 = vld [vmem:[%s1547_s1 + $0x80] sm:$0xff] }
   0x8   :  { %123 = vmatpush.msra.mxu2 %v1061_v8  ;;  %253 = vmatpush.msrb.mxu0 %v1054_v7  ;;  %v1158_v21 = vld [vmem:[%s1547_s1 + $0x10] sm:$0xff]  ;;  %v1163_v22 = vld [vmem:[%s1547_s1 + $0x78] sm:$0xff]  ;;  %v1168_v23 = vld [vmem:[%s1547_s1 + $0x8] sm:$0xff] }
   0x9   :  { %100 = vmatpush.msra.mxu1 %v1068_v9  ;;  %276 = vmatpush.msrb.mxu3 %v1061_v8  ;;  %v1173_v24 = vld [vmem:[%s1547_s1 + $0x70] sm:$0xff]  ;;  %v1186_v25 = vld [vmem:[%s1547_s1] sm:$0xff]  ;;  %v1191_v26 = vld [vmem:[%s1547_s1 + $0x68] sm:$0xff] }
   0xa   :  { %124 = vmatpush.msra.mxu2 %v1075_v10  ;;  %254 = vmatpush.msrb.mxu0 %v1068_v9  ;;  %v1218_v27 = vld [vmem:[%s1545_s0 + $0x8] sm:$0x1f]  ;;  %v30_v35 = vld [vmem:[%s1547_s1 + $0x60] sm:$0xff]  ;;  %v850_v62 = vld [vmem:[%s1546_s2 + $0x10] sm:$0xff] }
   0xb   :  { %843 = vmatmul.msk.f32.gmra.mxu0 %vm47_vm0, %v1013_v2  ;;  %101 = vmatpush.msra.mxu1 %v1082_v11  ;;  %v53_v28 = vperm.slane %v1218_v27, 0  ;;  %v1261_v36 = vperm.slane %v30_v35, 0  ;;  %v841_v38 = vld [vmem:[%s1547_s1 + $0xc8] sm:$0xff] }
   0xc   :  { %125 = vmatpush.msra.mxu2 %v1089_v12  ;;  %277 = vmatpush.msrb.mxu3 %v1075_v10  ;;  %v1267_v40 = vperm.slane %v841_v38, 0 }
   0xd   :  { %102 = vmatpush.msra.mxu1 %v1096_v13  ;;  %255 = vmatpush.msrb.mxu0 %v1082_v11 }
   0xe   :  { %126 = vmatpush.msra.mxu2 %v1105_v14  ;;  %278 = vmatpush.msrb.mxu3 %v1089_v12 }
   0xf   :  { %103 = vmatpush.msra.mxu1 %v1111_v15  ;;  %256 = vmatpush.msrb.mxu0 %v1096_v13 }
  0x10   :  { %127 = vmatpush.msra.mxu2 %v1118_v16  ;;  %279 = vmatpush.msrb.mxu3 %v1105_v14 }
  0x11   :  { %257 = vmatpush.msrb.mxu0 %v1111_v15  ;;  %104 = vmatpush.msra.mxu1 %v1132_v17 }
  0x12   :  { %280 = vmatpush.msrb.mxu3 %v1118_v16  ;;  %128 = vmatpush.msra.mxu2 %v1137_v18 }
  0x13   :  { %258 = vmatpush.msrb.mxu0 %v1132_v17  ;;  %105 = vmatpush.msra.mxu1 %v1144_v19 }
  0x14   :  { %281 = vmatpush.msrb.mxu3 %v1137_v18  ;;  %129 = vmatpush.msra.mxu2 %v1149_v20 }
  0x15   :  { %259 = vmatpush.msrb.mxu0 %v1144_v19  ;;  %106 = vmatpush.msra.mxu1 %v1158_v21 }
  0x16   :  { %282 = vmatpush.msrb.mxu3 %v1149_v20  ;;  %130 = vmatpush.msra.mxu2 %v1163_v22 }
  0x17   :  { %260 = vmatpush.msrb.mxu0 %v1158_v21  ;;  %107 = vmatpush.msra.mxu1 %v1168_v23 }
  0x18   :  { %283 = vmatpush.msrb.mxu3 %v1163_v22  ;;  %131 = vmatpush.msra.mxu2 %v1173_v24 }
  0x19   :  { %261 = vmatpush.msrb.mxu0 %v1168_v23  ;;  %108 = vmatpush.msra.mxu1 %v1186_v25 }
  0x1a   :  { %284 = vmatpush.msrb.mxu3 %v1173_v24  ;;  %132 = vmatpush.msra.mxu2 %v1191_v26 }
  0x1b   :  { %262 = vmatpush.msrb.mxu0 %v1186_v25  ;;  %557 = vmatpush.msrb.mxu1 %v1024_v3 }
  0x1c   :  { %285 = vmatpush.msrb.mxu3 %v1191_v26  ;;  %384 = vmatpush.msrb.mxu2 %v1003_v0 }
  0x1d   :  { %427 = vmatpush.msra.mxu0 %v1029_v4  ;;  %558 = vmatpush.msrb.mxu1 %v1034_v5 }
  0x1f   :  { %428 = vmatpush.msra.mxu0 %v1048_v6  ;;  %559 = vmatpush.msrb.mxu1 %v1054_v7 }
  0x21   :  { %429 = vmatpush.msra.mxu0 %v1061_v8  ;;  %560 = vmatpush.msrb.mxu1 %v1068_v9 }
  0x23   :  { %430 = vmatpush.msra.mxu0 %v1075_v10  ;;  %561 = vmatpush.msrb.mxu1 %v1082_v11 }
  0x25   :  { %431 = vmatpush.msra.mxu0 %v1089_v12  ;;  %562 = vmatpush.msrb.mxu1 %v1096_v13 }
  0x27   :  { %432 = vmatpush.msra.mxu0 %v1105_v14  ;;  %563 = vmatpush.msrb.mxu1 %v1111_v15 }
  0x29   :  { %433 = vmatpush.msra.mxu0 %v1118_v16  ;;  %564 = vmatpush.msrb.mxu1 %v1132_v17 }
  0x2b   :  { %434 = vmatpush.msra.mxu0 %v1137_v18  ;;  %565 = vmatpush.msrb.mxu1 %v1144_v19 }
  0x2d   :  { %435 = vmatpush.msra.mxu0 %v1149_v20  ;;  %566 = vmatpush.msrb.mxu1 %v1158_v21 }
  0x2f   :  { %436 = vmatpush.msra.mxu0 %v1163_v22  ;;  %567 = vmatpush.msrb.mxu1 %v1168_v23 }
  0x31   :  { %437 = vmatpush.msra.mxu0 %v1173_v24  ;;  %568 = vmatpush.msrb.mxu1 %v1186_v25 }
  0x33   :  { %438 = vmatpush.msra.mxu0 %v1191_v26 }
  0x80   :  { %v77_v29 = vpop.f32.mrf.mxu0 }
  0x81   :  { %v78_v30 = vadd.f32 %v77_v29, %v53_v28 }
  0x83   :  { %914 = vtanh.f32 %v78_v30 }
  0x88   :  { %v80_v31 = vpop.f32.mrf.mxu0 }
  0x89   :  { %v915_v32 = vpop.eup %914  ;;  %v81_v33 = vadd.f32 %v80_v31, %v53_v28  ;;  %v185_v31 = vmul.f32 0.31622776, %v850_v62 }
  0x8a   :  { %844 = vmatmul.msk.f32.vlgmr.msra.gmra.mxu1 %vm86_vm1, %v915_v32  ;;  %846 = vmatmul.msk.f32.vlgmr.msra.gmra.mxu2 %vm86_vm1, %v915_v32 }
  0x8b   :  { %916 = vtanh.f32 %v81_v33  ;;  %404 = vmatpush.msra.mxu2 %v1024_v3  ;;  %733 = vmatpush.msra.mxu1 %v1029_v4 }
  0x8d   :  { %405 = vmatpush.msra.mxu2 %v1034_v5  ;;  %734 = vmatpush.msra.mxu1 %v1048_v6 }
  0x8f   :  { %406 = vmatpush.msra.mxu2 %v1054_v7  ;;  %735 = vmatpush.msra.mxu1 %v1061_v8 }
  0x91   :  { %v917_v34 = vpop.eup %916  ;;  %407 = vmatpush.msra.mxu2 %v1068_v9  ;;  %736 = vmatpush.msra.mxu1 %v1075_v10 }
  0x92   :  { %845 = vmatmul.msk.f32.gmra.mxu1 %vm86_vm1, %v917_v34  ;;  %847 = vmatmul.msk.f32.gmra.mxu2 %vm86_vm1, %v917_v34 }
  0x93   :  { %408 = vmatpush.msra.mxu2 %v1082_v11  ;;  %737 = vmatpush.msra.mxu1 %v1089_v12 }
  0x95   :  { %409 = vmatpush.msra.mxu2 %v1096_v13  ;;  %738 = vmatpush.msra.mxu1 %v1105_v14 }
  0x97   :  { %410 = vmatpush.msra.mxu2 %v1111_v15  ;;  %739 = vmatpush.msra.mxu1 %v1118_v16 }
  0x99   :  { %411 = vmatpush.msra.mxu2 %v1132_v17  ;;  %740 = vmatpush.msra.mxu1 %v1137_v18 }
  0x9b   :  { %412 = vmatpush.msra.mxu2 %v1144_v19  ;;  %741 = vmatpush.msra.mxu1 %v1149_v20 }
  0x9d   :  { %413 = vmatpush.msra.mxu2 %v1158_v21  ;;  %742 = vmatpush.msra.mxu1 %v1163_v22 }
  0x9f   :  { %414 = vmatpush.msra.mxu2 %v1168_v23  ;;  %743 = vmatpush.msra.mxu1 %v1173_v24 }
  0xa1   :  { %415 = vmatpush.msra.mxu2 %v1186_v25  ;;  %744 = vmatpush.msra.mxu1 %v1191_v26 }
 0x107   :  { %v110_v37 = vpop.f32.mrf.mxu1 }
 0x108   :  { %v111_v39 = vadd.f32 %v110_v37, %v1261_v36 }
 0x10a   :  { %v191_v41 = vmul.f32 %v111_v39, %v111_v39  ;;  %v178_v29 = vmul.f32 0.1, %v111_v39 }
 0x10c   :  { %v193_v42 = vsel %vm47_vm0, %v191_v41, 0.0  ;;  %v180_v38 = vadd.f32 %v178_v29, %v1008_v1 }
 0x10d   :  { %v134_v43 = vpop.f32.mrf.mxu2  ;;  %194 = vadd.xlane.f32.xlu0 %v193_v42 }
 0x10e   :  { %v135_v44 = vadd.f32 %v134_v43, %v1267_v40 }
 0x10f   :  { %v113_v45 = vpop.f32.mrf.mxu1 }
 0x110   :  { %v848_v46 = vmul.f32 -1.442695, %v135_v44  ;;  %v114_v47 = vadd.f32 %v113_v45, %v1261_v36  ;;  %v851_v44 = vld [vmem:[%s1546_s2 + $0x18] sm:$0xff] }
 0x112   :  { %918 = vpow2.f32 %v848_v46  ;;  %v192_v48 = vmul.f32 %v114_v47, %v114_v47 }
 0x114   :  { %v196_v49 = vsel %vm47_vm0, %v192_v48, 0.0  ;;  %v179_v48 = vmul.f32 0.1, %v114_v47 }
 0x115   :  { %v137_v50 = vpop.f32.mrf.mxu2  ;;  %197 = vadd.xlane.f32.xlu0 %v196_v49  ;;  %v186_v49 = vmul.f32 0.31622776, %v851_v44 }
 0x116   :  { %v138_v51 = vadd.f32 %v137_v50, %v1267_v40  ;;  %v181_v47 = vadd.f32 %v179_v48, %v1013_v2 }
 0x118   :  { %v919_v52 = vpop.eup %918  ;;  %v849_v53 = vmul.f32 -1.442695, %v138_v51 }
 0x119   :  { %v146_v54 = vadd.f32 1.0, %v919_v52 }
 0x11a   :  { %920 = vpow2.f32 %v849_v53 }
 0x11b   :  { %922 = vrcp.f32 %v146_v54  ;;  %v159_v61 = vand.u32 2147483648, %v146_v54  ;;  %v157_v28 = vand.u32 2147483647, %v146_v54  ;;  %vm153_vm4 = vweird.f32 %v146_v54 }
 0x11d   :  { %v160_v33 = vor.u32 1.1754944e-38, %v159_v61  ;;  %vm158_vm6 = vcmp.eq.f32.partialorder %v157_v28, 8.507059e+37 }
 0x120   :  { %v921_v56 = vpop.eup %920 }
 0x121   :  { %v923_v57 = vpop.eup %922  ;;  %v147_v58 = vadd.f32 1.0, %v921_v56 }
 0x122   :  { %v149_v59 = vmul.f32 %v923_v57, %v146_v54  ;;  %vm154_vm3 = vweird.f32 %v923_v57 }
 0x123   :  { %924 = vrcp.f32 %v147_v58  ;;  %vm155_vm5 = vmor %vm153_vm4, %vm154_vm3  ;;  %v174_v43 = vand.u32 2147483648, %v147_v58  ;;  %v172_v46 = vand.u32 2147483647, %v147_v58  ;;  %vm168_vm8 = vweird.f32 %v147_v58 }
 0x124   :  { %v150_v60 = vsub.f32 1.0, %v149_v59 }
 0x125   :  { %v175_v50 = vor.u32 1.1754944e-38, %v174_v43  ;;  %vm173_vm10 = vcmp.eq.f32.partialorder %v172_v46, 8.507059e+37 }
 0x126   :  { %v151_v63 = vmul.f32 %v923_v57, %v150_v60 }
 0x128   :  { %v152_v30 = vadd.f32 %v923_v57, %v151_v63 }
 0x129   :  { %v925_v32 = vpop.eup %924 }
 0x12a   :  { %v164_v34 = vmul.f32 %v925_v32, %v147_v58  ;;  %v156_v35 = vsel %vm155_vm5, %v923_v57, %v152_v30  ;;  %vm169_vm7 = vweird.f32 %v925_v32  ;;  %v209_v58 = vperm.slane %v1218_v27, 1 }
 0x12b   :  { %v161_v37 = vsel %vm158_vm6, %v160_v33, %v156_v35  ;;  %vm170_vm9 = vmor %vm168_vm8, %vm169_vm7 }
 0x12c   :  { %v165_v41 = vsub.f32 1.0, %v164_v34  ;;  %v187_v42 = vmul.f32 %v185_v31, %v161_v37 }
 0x12e   :  { %v1289_v39 = vadd.f32 %v187_v42, %v180_v38  ;;  %v166_v45 = vmul.f32 %v925_v32, %v165_v41 }
 0x130   :  { %852 = vst.msk [vmem:[%s1548_s3 + $0x10] sm:$0xff] %vm47_vm0, %v1289_v39  ;;  %856 = vmatmul.msk.f32.vlgmr.msra.gmra.mxu3 %vm47_vm0, %v1289_v39  ;;  %v167_v1 = vadd.f32 %v925_v32, %v166_v45  ;;  %v865_v45 = vld [vmem:[%s1546_s2 + $0x28] sm:$0xff] }
 0x131   :  { %537 = vmatpush.msra.mxu3 %v1003_v0 }
 0x132   :  { %v171_v51 = vsel %vm170_vm9, %v925_v32, %v167_v1 }
 0x133   :  { %v176_v52 = vsel %vm173_vm10, %v175_v50, %v171_v51  ;;  %v339_v50 = vmul.f32 0.31622776, %v865_v45 }
 0x134   :  { %v188_v53 = vmul.f32 %v186_v49, %v176_v52 }
 0x136   :  { %v1300_v54 = vadd.f32 %v188_v53, %v181_v47 }
 0x138   :  { %853 = vst.msk [vmem:[%s1548_s3 + $0x18] sm:$0xff] %vm47_vm0, %v1300_v54  ;;  %857 = vmatmul.msk.f32.gmra.mxu3 %vm47_vm0, %v1300_v54 }
 0x180   :  { %v195_v55 = vpop.xlane.xlu0 %194 }
 0x181   :  { %v1309_v56 = vmul.f32 0.1, %v195_v55 }
 0x183   :  { %854 = vst.msk [vmem:[%s1549_s4 + $0x10] sm:$0xff] %vm50_vm2, %v1309_v56 }
 0x188   :  { %v198_v2 = vpop.xlane.xlu0 %197 }
 0x189   :  { %v1316_v57 = vmul.f32 0.1, %v198_v2 }
 0x18b   :  { %855 = vst.msk [vmem:[%s1549_s4 + $0x18] sm:$0xff] %vm50_vm2, %v1316_v57 }
 0x1b3   :  { %v233_v59 = vpop.f32.mrf.mxu3 }
 0x1b4   :  { %v234_v60 = vadd.f32 %v233_v59, %v209_v58 }
 0x1b6   :  { %926 = vtanh.f32 %v234_v60 }
 0x1bb   :  { %v236_v61 = vpop.f32.mrf.mxu3 }
 0x1bc   :  { %v927_v62 = vpop.eup %926  ;;  %v237_v63 = vadd.f32 %v236_v61, %v209_v58 }
 0x1bd   :  { %858 = vmatmul.msk.f32.vlgmr.msrb.gmra.mxu0 %vm86_vm1, %v927_v62  ;;  %860 = vmatmul.msk.f32.vlgmr.msrb.gmra.mxu3 %vm86_vm1, %v927_v62 }
 0x1be   :  { %928 = vtanh.f32 %v237_v63  ;;  %580 = vmatpush.msrb.mxu3 %v1029_v4  ;;  %710 = vmatpush.msrb.mxu0 %v1024_v3 }
 0x1c0   :  { %581 = vmatpush.msrb.mxu3 %v1048_v6  ;;  %711 = vmatpush.msrb.mxu0 %v1034_v5 }
 0x1c2   :  { %582 = vmatpush.msrb.mxu3 %v1061_v8  ;;  %712 = vmatpush.msrb.mxu0 %v1054_v7 }
 0x1c4   :  { %v929_v28 = vpop.eup %928  ;;  %583 = vmatpush.msrb.mxu3 %v1075_v10  ;;  %713 = vmatpush.msrb.mxu0 %v1068_v9 }
 0x1c5   :  { %859 = vmatmul.msk.f32.gmra.mxu0 %vm86_vm1, %v929_v28  ;;  %861 = vmatmul.msk.f32.gmra.mxu3 %vm86_vm1, %v929_v28 }
 0x1c6   :  { %584 = vmatpush.msrb.mxu3 %v1089_v12  ;;  %714 = vmatpush.msrb.mxu0 %v1082_v11 }
 0x1c8   :  { %585 = vmatpush.msrb.mxu3 %v1105_v14  ;;  %715 = vmatpush.msrb.mxu0 %v1096_v13 }
 0x1ca   :  { %586 = vmatpush.msrb.mxu3 %v1118_v16  ;;  %716 = vmatpush.msrb.mxu0 %v1111_v15 }
 0x1cc   :  { %587 = vmatpush.msrb.mxu3 %v1137_v18  ;;  %717 = vmatpush.msrb.mxu0 %v1132_v17 }
 0x1ce   :  { %588 = vmatpush.msrb.mxu3 %v1149_v20  ;;  %718 = vmatpush.msrb.mxu0 %v1144_v19 }
 0x1d0   :  { %589 = vmatpush.msrb.mxu3 %v1163_v22  ;;  %719 = vmatpush.msrb.mxu0 %v1158_v21 }
 0x1d2   :  { %590 = vmatpush.msrb.mxu3 %v1173_v24  ;;  %720 = vmatpush.msrb.mxu0 %v1168_v23 }
 0x1d4   :  { %591 = vmatpush.msrb.mxu3 %v1191_v26  ;;  %721 = vmatpush.msrb.mxu0 %v1186_v25  ;;  %v864_v25 = vld [vmem:[%s1546_s2 + $0x20] sm:$0xff] }
 0x1d5   :  { %v338_v32 = vmul.f32 0.31622776, %v864_v25 }
 0x23a   :  { %v264_v3 = vpop.f32.mrf.mxu0 }
 0x23b   :  { %v265_v4 = vadd.f32 %v264_v3, %v1261_v36 }
 0x23d   :  { %v344_v5 = vmul.f32 %v265_v4, %v265_v4  ;;  %v331_v30 = vmul.f32 0.1, %v265_v4 }
 0x23f   :  { %v346_v6 = vsel %vm47_vm0, %v344_v5, 0.0  ;;  %v333_v41 = vadd.f32 %v331_v30, %v1289_v39  ;;  %v878_v30 = vld [vmem:[%s1546_s2 + $0x30] sm:$0xff] }
 0x240   :  { %v287_v7 = vpop.f32.mrf.mxu3  ;;  %347 = vadd.xlane.f32.xlu1 %v346_v6 }
 0x241   :  { %v288_v8 = vadd.f32 %v287_v7, %v1267_v40 }
 0x242   :  { %v267_v9 = vpop.f32.mrf.mxu0 }
 0x243   :  { %v862_v10 = vmul.f32 -1.442695, %v288_v8  ;;  %v268_v11 = vadd.f32 %v267_v9, %v1261_v36 }
 0x245   :  { %930 = vpow2.f32 %v862_v10  ;;  %v345_v12 = vmul.f32 %v268_v11, %v268_v11  ;;  %v332_v49 = vmul.f32 0.1, %v268_v11 }
 0x247   :  { %v349_v13 = vsel %vm47_vm0, %v345_v12, 0.0  ;;  %v334_v53 = vadd.f32 %v332_v49, %v1300_v54  ;;  %v879_v49 = vld [vmem:[%s1546_s2 + $0x38] sm:$0xff] }
 0x248   :  { %v290_v14 = vpop.f32.mrf.mxu3  ;;  %350 = vadd.xlane.f32.xlu1 %v349_v13 }
 0x249   :  { %v291_v15 = vadd.f32 %v290_v14, %v1267_v40 }
 0x24b   :  { %v931_v16 = vpop.eup %930  ;;  %v863_v17 = vmul.f32 -1.442695, %v291_v15 }
 0x24c   :  { %v299_v18 = vadd.f32 1.0, %v931_v16 }
 0x24d   :  { %932 = vpow2.f32 %v863_v17 }
 0x24e   :  { %934 = vrcp.f32 %v299_v18  ;;  %v312_v24 = vand.u32 2147483648, %v299_v18  ;;  %v310_v29 = vand.u32 2147483647, %v299_v18  ;;  %vm306_vm12 = vweird.f32 %v299_v18 }
 0x250   :  { %v313_v34 = vor.u32 1.1754944e-38, %v312_v24  ;;  %vm311_vm14 = vcmp.eq.f32.partialorder %v310_v29, 8.507059e+37 }
 0x253   :  { %v933_v19 = vpop.eup %932 }
 0x254   :  { %v935_v20 = vpop.eup %934  ;;  %v300_v21 = vadd.f32 1.0, %v933_v19 }
 0x255   :  { %v302_v22 = vmul.f32 %v935_v20, %v299_v18  ;;  %vm307_vm11 = vweird.f32 %v935_v20 }
 0x256   :  { %936 = vrcp.f32 %v300_v21  ;;  %vm308_vm13 = vmor %vm306_vm12, %vm307_vm11  ;;  %v327_v44 = vand.u32 2147483648, %v300_v21  ;;  %v325_v1 = vand.u32 2147483647, %v300_v21  ;;  %vm321_vm3 = vweird.f32 %v300_v21 }
 0x257   :  { %v303_v23 = vsub.f32 1.0, %v302_v22 }
 0x258   :  { %v328_v51 = vor.u32 1.1754944e-38, %v327_v44  ;;  %vm326_vm5 = vcmp.eq.f32.partialorder %v325_v1, 8.507059e+37 }
 0x259   :  { %v304_v26 = vmul.f32 %v935_v20, %v303_v23 }
 0x25b   :  { %v305_v31 = vadd.f32 %v935_v20, %v304_v26 }
 0x25c   :  { %v937_v33 = vpop.eup %936 }
 0x25d   :  { %v317_v35 = vmul.f32 %v937_v33, %v300_v21  ;;  %v309_v37 = vsel %vm308_vm13, %v935_v20, %v305_v31  ;;  %vm322_vm15 = vweird.f32 %v937_v33 }
 0x25e   :  { %v314_v38 = vsel %vm311_vm14, %v313_v34, %v309_v37  ;;  %vm323_vm4 = vmor %vm321_vm3, %vm322_vm15 }
 0x25f   :  { %v318_v42 = vsub.f32 1.0, %v317_v35  ;;  %v340_v43 = vmul.f32 %v338_v32, %v314_v38  ;;  %v491_v35 = vmul.f32 0.31622776, %v878_v30 }
 0x261   :  { %v1365_v46 = vadd.f32 %v340_v43, %v333_v41  ;;  %v319_v48 = vmul.f32 %v937_v33, %v318_v42 }
 0x263   :  { %866 = vst.msk [vmem:[%s1548_s3 + $0x20] sm:$0xff] %vm47_vm0, %v1365_v46  ;;  %870 = vmatmul.msk.f32.vlgmr.msrb.gmra.mxu2 %vm47_vm0, %v1365_v46  ;;  %v320_v39 = vadd.f32 %v937_v33, %v319_v48 }
 0x264   :  { %690 = vmatpush.msrb.mxu2 %v1003_v0 }
 0x265   :  { %v324_v52 = vsel %vm323_vm4, %v937_v33, %v320_v39 }
 0x266   :  { %v329_v47 = vsel %vm326_vm5, %v328_v51, %v324_v52 }
 0x267   :  { %v341_v55 = vmul.f32 %v339_v50, %v329_v47  ;;  %v492_v47 = vmul.f32 0.31622776, %v879_v49 }
 0x269   :  { %v1376_v2 = vadd.f32 %v341_v55, %v334_v53 }
 0x26b   :  { %867 = vst.msk [vmem:[%s1548_s3 + $0x28] sm:$0xff] %vm47_vm0, %v1376_v2  ;;  %871 = vmatmul.msk.f32.gmra.mxu2 %vm47_vm0, %v1376_v2 }
 0x2b3   :  { %v348_v58 = vpop.xlane.xlu1 %347 }
 0x2b4   :  { %v352_v59 = vmul.f32 0.1, %v348_v58 }
 0x2b6   :  { %v1386_v60 = vadd.f32 %v352_v59, %v1309_v56  ;;  %v362_v56 = vperm.slane %v1218_v27, 2 }
 0x2b8   :  { %868 = vst.msk [vmem:[%s1549_s4 + $0x20] sm:$0xff] %vm50_vm2, %v1386_v60 }
 0x2bb   :  { %v351_v54 = vpop.xlane.xlu1 %350 }
 0x2bc   :  { %v353_v61 = vmul.f32 0.1, %v351_v54 }
 0x2be   :  { %v1394_v62 = vadd.f32 %v353_v61, %v1316_v57 }
 0x2c0   :  { %869 = vst.msk [vmem:[%s1549_s4 + $0x28] sm:$0xff] %vm50_vm2, %v1394_v62 }
 0x2e6   :  { %v386_v63 = vpop.f32.mrf.mxu2 }
 0x2e7   :  { %v387_v28 = vadd.f32 %v386_v63, %v362_v56 }
 0x2e9   :  { %938 = vtanh.f32 %v387_v28 }
 0x2ee   :  { %v389_v3 = vpop.f32.mrf.mxu2 }
 0x2ef   :  { %v939_v4 = vpop.eup %938  ;;  %v390_v5 = vadd.f32 %v389_v3, %v362_v56 }
 0x2f0   :  { %872 = vmatmul.msk.f32.vlgmr.msra.gmra.mxu2 %vm86_vm1, %v939_v4  ;;  %874 = vmatmul.msk.f32.vlgmr.msra.gmra.mxu0 %vm86_vm1, %v939_v4 }
 0x2f1   :  { %940 = vtanh.f32 %v390_v5 }
 0x2f7   :  { %v941_v57 = vpop.eup %940 }
 0x2f8   :  { %873 = vmatmul.msk.f32.gmra.mxu2 %vm86_vm1, %v941_v57  ;;  %875 = vmatmul.msk.f32.gmra.mxu0 %vm86_vm1, %v941_v57 }
 0x36d   :  { %v440_v6 = vpop.f32.mrf.mxu0 }
 0x36e   :  { %v441_v7 = vadd.f32 %v440_v6, %v1267_v40 }
 0x370   :  { %v876_v8 = vmul.f32 -1.442695, %v441_v7 }
 0x372   :  { %942 = vpow2.f32 %v876_v8 }
 0x373   :  { %v417_v9 = vpop.f32.mrf.mxu2 }
 0x374   :  { %v418_v10 = vadd.f32 %v417_v9, %v1261_v36 }
 0x375   :  { %v443_v11 = vpop.f32.mrf.mxu0 }
 0x376   :  { %v444_v12 = vadd.f32 %v443_v11, %v1267_v40  ;;  %v497_v13 = vmul.f32 %v418_v10, %v418_v10  ;;  %v484_v34 = vmul.f32 0.1, %v418_v10 }
 0x378   :  { %v943_v14 = vpop.eup %942  ;;  %v877_v15 = vmul.f32 -1.442695, %v444_v12  ;;  %v499_v16 = vsel %vm47_vm0, %v497_v13, 0.0  ;;  %v486_v44 = vadd.f32 %v484_v34, %v1365_v46 }
 0x379   :  { %v452_v17 = vadd.f32 1.0, %v943_v14  ;;  %500 = vadd.xlane.f32.xlu2 %v499_v16 }
 0x37a   :  { %944 = vpow2.f32 %v877_v15 }
 0x37b   :  { %946 = vrcp.f32 %v452_v17  ;;  %v420_v18 = vpop.f32.mrf.mxu2  ;;  %v465_v29 = vand.u32 2147483648, %v452_v17  ;;  %v463_v32 = vand.u32 2147483647, %v452_v17  ;;  %vm459_vm7 = vweird.f32 %v452_v17 }
 0x37c   :  { %v421_v19 = vadd.f32 %v420_v18, %v1261_v36 }
 0x37d   :  { %v466_v38 = vor.u32 1.1754944e-38, %v465_v29  ;;  %vm464_vm9 = vcmp.eq.f32.partialorder %v463_v32, 8.507059e+37  ;;  %v892_v32 = vld [vmem:[%s1546_s2 + $0x40] sm:$0xff] }
 0x37e   :  { %v498_v20 = vmul.f32 %v421_v19, %v421_v19  ;;  %v485_v52 = vmul.f32 0.1, %v421_v19 }
 0x380   :  { %v945_v21 = vpop.eup %944  ;;  %v502_v22 = vsel %vm47_vm0, %v498_v20, 0.0  ;;  %v487_v59 = vadd.f32 %v485_v52, %v1376_v2 }
 0x381   :  { %v947_v23 = vpop.eup %946  ;;  %v453_v24 = vadd.f32 1.0, %v945_v21  ;;  %503 = vadd.xlane.f32.xlu2 %v502_v22 }
 0x382   :  { %v455_v25 = vmul.f32 %v947_v23, %v452_v17  ;;  %vm460_vm6 = vweird.f32 %v947_v23 }
 0x383   :  { %948 = vrcp.f32 %v453_v24  ;;  %vm461_vm8 = vmor %vm459_vm7, %vm460_vm6  ;;  %v480_v1 = vand.u32 2147483648, %v453_v24  ;;  %v478_v51 = vand.u32 2147483647, %v453_v24  ;;  %vm474_vm11 = vweird.f32 %v453_v24 }
 0x384   :  { %v456_v26 = vsub.f32 1.0, %v455_v25 }
 0x385   :  { %v481_v53 = vor.u32 1.1754944e-38, %v480_v1  ;;  %vm479_vm13 = vcmp.eq.f32.partialorder %v478_v51, 8.507059e+37  ;;  %v893_v51 = vld [vmem:[%s1546_s2 + $0x48] sm:$0xff] }
 0x386   :  { %v457_v31 = vmul.f32 %v947_v23, %v456_v26 }
 0x388   :  { %v458_v33 = vadd.f32 %v947_v23, %v457_v31 }
 0x389   :  { %v949_v37 = vpop.eup %948 }
 0x38a   :  { %v462_v41 = vsel %vm461_vm8, %v947_v23, %v458_v33  ;;  %v470_v42 = vmul.f32 %v949_v37, %v453_v24  ;;  %vm475_vm10 = vweird.f32 %v949_v37 }
 0x38b   :  { %v467_v43 = vsel %vm464_vm9, %v466_v38, %v462_v41  ;;  %vm476_vm12 = vmor %vm474_vm11, %vm475_vm10  ;;  %v644_v38 = vmul.f32 0.31622776, %v892_v32 }
 0x38c   :  { %v493_v45 = vmul.f32 %v491_v35, %v467_v43  ;;  %v471_v48 = vsub.f32 1.0, %v470_v42 }
 0x38e   :  { %v1419_v39 = vadd.f32 %v493_v45, %v486_v44  ;;  %v472_v50 = vmul.f32 %v949_v37, %v471_v48 }
 0x390   :  { %880 = vst.msk [vmem:[%s1548_s3 + $0x30] sm:$0xff] %vm47_vm0, %v1419_v39  ;;  %884 = vmatmul.msk.f32.vlgmr.msra.gmra.mxu3 %vm47_vm0, %v1419_v39  ;;  %v473_v46 = vadd.f32 %v949_v37, %v472_v50 }
 0x391   :  { %912 = vmatpush.msra.mxu3 %v1003_v0 }
 0x392   :  { %v477_v55 = vsel %vm476_vm12, %v949_v37, %v473_v46 }
 0x393   :  { %v482_v58 = vsel %vm479_vm13, %v481_v53, %v477_v55 }
 0x394   :  { %v494_v54 = vmul.f32 %v492_v47, %v482_v58 }
 0x396   :  { %v1430_v61 = vadd.f32 %v494_v54, %v487_v59 }
 0x398   :  { %881 = vst.msk [vmem:[%s1548_s3 + $0x38] sm:$0xff] %vm47_vm0, %v1430_v61  ;;  %885 = vmatmul.msk.f32.gmra.mxu3 %vm47_vm0, %v1430_v61 }
 0x3ec   :  { %v501_v56 = vpop.xlane.xlu2 %500 }
 0x3ed   :  { %v505_v63 = vmul.f32 0.1, %v501_v56 }
 0x3ef   :  { %v1440_v0 = vadd.f32 %v505_v63, %v1386_v60  ;;  %v515_v60 = vperm.slane %v1218_v27, 3 }
 0x3f1   :  { %882 = vst.msk [vmem:[%s1549_s4 + $0x30] sm:$0xff] %vm50_vm2, %v1440_v0 }
 0x3f4   :  { %v504_v2 = vpop.xlane.xlu2 %503 }
 0x3f5   :  { %v506_v28 = vmul.f32 0.1, %v504_v2 }
 0x3f7   :  { %v1448_v3 = vadd.f32 %v506_v28, %v1394_v62 }
 0x3f9   :  { %883 = vst.msk [vmem:[%s1549_s4 + $0x38] sm:$0xff] %vm50_vm2, %v1448_v3 }
 0x413   :  { %v539_v4 = vpop.f32.mrf.mxu3 }
 0x414   :  { %v540_v5 = vadd.f32 %v539_v4, %v515_v60 }
 0x416   :  { %950 = vtanh.f32 %v540_v5 }
 0x41b   :  { %v542_v57 = vpop.f32.mrf.mxu3 }
 0x41c   :  { %v951_v6 = vpop.eup %950  ;;  %v543_v7 = vadd.f32 %v542_v57, %v515_v60 }
 0x41d   :  { %886 = vmatmul.msk.f32.vlgmr.msrb.gmra.mxu1 %vm86_vm1, %v951_v6  ;;  %888 = vmatmul.msk.f32.vlgmr.msrb.gmra.mxu3 %vm86_vm1, %v951_v6 }
 0x41e   :  { %952 = vtanh.f32 %v543_v7 }
 0x424   :  { %v953_v62 = vpop.eup %952 }
 0x425   :  { %887 = vmatmul.msk.f32.gmra.mxu1 %vm86_vm1, %v953_v62  ;;  %889 = vmatmul.msk.f32.gmra.mxu3 %vm86_vm1, %v953_v62 }
 0x49a   :  { %v570_v8 = vpop.f32.mrf.mxu1 }
 0x49b   :  { %v571_v9 = vadd.f32 %v570_v8, %v1261_v36 }
 0x49d   :  { %v650_v10 = vmul.f32 %v571_v9, %v571_v9  ;;  %v637_v35 = vmul.f32 0.1, %v571_v9 }
 0x49f   :  { %v652_v11 = vsel %vm47_vm0, %v650_v10, 0.0  ;;  %v639_v48 = vadd.f32 %v637_v35, %v1419_v39  ;;  %v645_v39 = vmul.f32 0.31622776, %v893_v51 }
 0x4a0   :  { %v593_v12 = vpop.f32.mrf.mxu3  ;;  %653 = vadd.xlane.f32.xlu0 %v652_v11 }
 0x4a1   :  { %v594_v13 = vadd.f32 %v593_v12, %v1267_v40 }
 0x4a2   :  { %v573_v14 = vpop.f32.mrf.mxu1 }
 0x4a3   :  { %v890_v15 = vmul.f32 -1.442695, %v594_v13  ;;  %v574_v16 = vadd.f32 %v573_v14, %v1261_v36 }
 0x4a5   :  { %954 = vpow2.f32 %v890_v15  ;;  %v651_v17 = vmul.f32 %v574_v16, %v574_v16  ;;  %v638_v53 = vmul.f32 0.1, %v574_v16 }
 0x4a7   :  { %v655_v18 = vsel %vm47_vm0, %v651_v17, 0.0  ;;  %v640_v56 = vadd.f32 %v638_v53, %v1430_v61 }
 0x4a8   :  { %v596_v19 = vpop.f32.mrf.mxu3  ;;  %656 = vadd.xlane.f32.xlu1 %v655_v18 }
 0x4a9   :  { %v597_v20 = vadd.f32 %v596_v19, %v1267_v40 }
 0x4ab   :  { %v955_v21 = vpop.eup %954  ;;  %v891_v22 = vmul.f32 -1.442695, %v597_v20 }
 0x4ac   :  { %v605_v23 = vadd.f32 1.0, %v955_v21 }
 0x4ad   :  { %956 = vpow2.f32 %v891_v22 }
 0x4ae   :  { %958 = vrcp.f32 %v605_v23  ;;  %v618_v31 = vand.u32 2147483648, %v605_v23  ;;  %v616_v34 = vand.u32 2147483647, %v605_v23  ;;  %vm612_vm15 = vweird.f32 %v605_v23 }
 0x4b0   :  { %v619_v42 = vor.u32 1.1754944e-38, %v618_v31  ;;  %vm617_vm4 = vcmp.eq.f32.partialorder %v616_v34, 8.507059e+37 }
 0x4b3   :  { %v957_v24 = vpop.eup %956 }
 0x4b4   :  { %v959_v25 = vpop.eup %958  ;;  %v606_v26 = vadd.f32 1.0, %v957_v24 }
 0x4b5   :  { %v608_v29 = vmul.f32 %v959_v25, %v605_v23  ;;  %vm613_vm14 = vweird.f32 %v959_v25 }
 0x4b6   :  { %960 = vrcp.f32 %v606_v26  ;;  %vm614_vm3 = vmor %vm612_vm15, %vm613_vm14  ;;  %v633_v50 = vand.u32 2147483648, %v606_v26  ;;  %v631_v46 = vand.u32 2147483647, %v606_v26  ;;  %vm627_vm6 = vweird.f32 %v606_v26 }
 0x4b7   :  { %v609_v30 = vsub.f32 1.0, %v608_v29 }
 0x4b8   :  { %v634_v58 = vor.u32 1.1754944e-38, %v633_v50  ;;  %vm632_vm8 = vcmp.eq.f32.partialorder %v631_v46, 8.507059e+37  ;;  %v907_v50 = vld [vmem:[%s1546_s2 + $0x58] sm:$0xff] }
 0x4b9   :  { %v610_v33 = vmul.f32 %v959_v25, %v609_v30 }
 0x4bb   :  { %v611_v37 = vadd.f32 %v959_v25, %v610_v33 }
 0x4bc   :  { %v961_v41 = vpop.eup %960 }
 0x4bd   :  { %v623_v43 = vmul.f32 %v961_v41, %v606_v26  ;;  %v615_v44 = vsel %vm614_vm3, %v959_v25, %v611_v37  ;;  %vm628_vm5 = vweird.f32 %v961_v41 }
 0x4be   :  { %v620_v45 = vsel %vm617_vm4, %v619_v42, %v615_v44  ;;  %vm629_vm7 = vmor %vm627_vm6, %vm628_vm5 }
 0x4bf   :  { %v624_v1 = vsub.f32 1.0, %v623_v43  ;;  %v646_v49 = vmul.f32 %v644_v38, %v620_v45 }
 0x4c1   :  { %v625_v52 = vmul.f32 %v961_v41, %v624_v1  ;;  %v1473_v47 = vadd.f32 %v646_v49, %v639_v48 }
 0x4c3   :  { %v626_v55 = vadd.f32 %v961_v41, %v625_v52  ;;  %894 = vst.msk [vmem:[%s1548_s3 + $0x40] sm:$0xff] %vm47_vm0, %v1473_v47  ;;  %898 = vmatmul.msk.f32.vlgmr.msrb.gmra.mxu2 %vm47_vm0, %v1473_v47 }
 0x4c5   :  { %v630_v59 = vsel %vm629_vm7, %v961_v41, %v626_v55 }
 0x4c6   :  { %v635_v54 = vsel %vm632_vm8, %v634_v58, %v630_v59 }
 0x4c7   :  { %v647_v63 = vmul.f32 %v645_v39, %v635_v54 }
 0x4c9   :  { %v1483_v2 = vadd.f32 %v647_v63, %v640_v56 }
 0x4cb   :  { %895 = vst.msk [vmem:[%s1548_s3 + $0x48] sm:$0xff] %vm47_vm0, %v1483_v2  ;;  %899 = vmatmul.msk.f32.vlgmr.msra.gmra.mxu3 %vm47_vm0, %v1483_v2 }
 0x513   :  { %v654_v28 = vpop.xlane.xlu0 %653 }
 0x514   :  { %v658_v60 = vmul.f32 0.1, %v654_v28 }
 0x516   :  { %v1493_v4 = vadd.f32 %v658_v60, %v1440_v0  ;;  %v668_v0 = vperm.slane %v1218_v27, 4 }
 0x518   :  { %896 = vst.msk [vmem:[%s1549_s4 + $0x40] sm:$0xff] %vm50_vm2, %v1493_v4 }
 0x51b   :  { %v657_v61 = vpop.xlane.xlu1 %656 }
 0x51c   :  { %v659_v5 = vmul.f32 0.1, %v657_v61 }
 0x51e   :  { %v1501_v57 = vadd.f32 %v659_v5, %v1448_v3 }
 0x520   :  { %897 = vst.msk [vmem:[%s1549_s4 + $0x48] sm:$0xff] %vm50_vm2, %v1501_v57 }
 0x546   :  { %v692_v6 = vpop.f32.mrf.mxu2 }
 0x547   :  { %v693_v7 = vadd.f32 %v692_v6, %v668_v0 }
 0x549   :  { %962 = vtanh.f32 %v693_v7 }
 0x54e   :  { %v695_v62 = vpop.f32.mrf.mxu3 }
 0x54f   :  { %v963_v8 = vpop.eup %962  ;;  %v696_v9 = vadd.f32 %v695_v62, %v668_v0 }
 0x550   :  { %900 = vmatmul.msk.f32.vlgmr.msrb.gmra.mxu0 %vm86_vm1, %v963_v8  ;;  %902 = vmatmul.msk.f32.vlgmr.msra.gmra.mxu1 %vm86_vm1, %v963_v8 }
 0x551   :  { %964 = vtanh.f32 %v696_v9 }
 0x557   :  { %v965_v3 = vpop.eup %964 }
 0x558   :  { %901 = vmatmul.msk.f32.gmra.mxu0 %vm86_vm1, %v965_v3  ;;  %903 = vmatmul.msk.f32.gmra.mxu1 %vm86_vm1, %v965_v3 }
 0x5cd   :  { %v723_v10 = vpop.f32.mrf.mxu0  ;;  %v746_v11 = vpop.f32.mrf.mxu1 }
 0x5ce   :  { %v724_v27 = vadd.f32 %v723_v10, %v1261_v36  ;;  %v747_v12 = vadd.f32 %v746_v11, %v1267_v40 }
 0x5d0   :  { %v904_v13 = vmul.f32 -1.442695, %v747_v12  ;;  %v803_v14 = vmul.f32 %v724_v27, %v724_v27  ;;  %v790_v34 = vmul.f32 0.1, %v724_v27 }
 0x5d2   :  { %966 = vpow2.f32 %v904_v13  ;;  %v805_v15 = vsel %vm47_vm0, %v803_v14, 0.0  ;;  %v792_v45 = vadd.f32 %v790_v34, %v1473_v47  ;;  %v798_v47 = vmul.f32 0.31622776, %v907_v50 }
 0x5d3   :  { %806 = vadd.xlane.f32.xlu2 %v805_v15 }
 0x5d5   :  { %v726_v16 = vpop.f32.mrf.mxu0  ;;  %v749_v17 = vpop.f32.mrf.mxu1 }
 0x5d6   :  { %v727_v18 = vadd.f32 %v726_v16, %v1261_v36  ;;  %v750_v19 = vadd.f32 %v749_v17, %v1267_v40  ;;  %v906_v36 = vld [vmem:[%s1546_s2 + $0x50] sm:$0xff] }
 0x5d7   :  { %v797_v37 = vmul.f32 0.31622776, %v906_v36 }
 0x5d8   :  { %v967_v20 = vpop.eup %966  ;;  %v905_v21 = vmul.f32 -1.442695, %v750_v19  ;;  %v804_v22 = vmul.f32 %v727_v18, %v727_v18  ;;  %v791_v53 = vmul.f32 0.1, %v727_v18 }
 0x5d9   :  { %v758_v23 = vadd.f32 1.0, %v967_v20 }
 0x5da   :  { %968 = vpow2.f32 %v905_v21  ;;  %v808_v24 = vsel %vm47_vm0, %v804_v22, 0.0  ;;  %v793_v54 = vadd.f32 %v791_v53, %v1483_v2 }
 0x5db   :  { %970 = vrcp.f32 %v758_v23  ;;  %809 = vadd.xlane.f32.xlu0 %v808_v24  ;;  %v771_v32 = vand.u32 2147483648, %v758_v23  ;;  %v769_v33 = vand.u32 2147483647, %v758_v23  ;;  %vm765_vm9 = vweird.f32 %v758_v23 }
 0x5dd   :  { %v772_v41 = vor.u32 1.1754944e-38, %v771_v32  ;;  %vm770_vm11 = vcmp.eq.f32.partialorder %v769_v33, 8.507059e+37 }
 0x5e0   :  { %v969_v25 = vpop.eup %968 }
 0x5e1   :  { %v971_v26 = vpop.eup %970  ;;  %v759_v29 = vadd.f32 1.0, %v969_v25 }
 0x5e2   :  { %v761_v30 = vmul.f32 %v971_v26, %v758_v23  ;;  %vm766_vm1 = vweird.f32 %v971_v26 }
 0x5e3   :  { %972 = vrcp.f32 %v759_v29  ;;  %vm767_vm10 = vmor %vm765_vm9, %vm766_vm1  ;;  %v786_v49 = vand.u32 2147483648, %v759_v29  ;;  %v784_v46 = vand.u32 2147483647, %v759_v29  ;;  %vm780_vm13 = vweird.f32 %v759_v29 }
 0x5e4   :  { %v762_v31 = vsub.f32 1.0, %v761_v30 }
 0x5e5   :  { %v787_v39 = vor.u32 1.1754944e-38, %v786_v49  ;;  %vm785_vm15 = vcmp.eq.f32.partialorder %v784_v46, 8.507059e+37 }
 0x5e6   :  { %v763_v40 = vmul.f32 %v971_v26, %v762_v31 }
 0x5e8   :  { %v764_v35 = vadd.f32 %v971_v26, %v763_v40 }
 0x5e9   :  { %v973_v38 = vpop.eup %972 }
 0x5ea   :  { %v768_v42 = vsel %vm767_vm10, %v971_v26, %v764_v35  ;;  %v776_v43 = vmul.f32 %v973_v38, %v759_v29  ;;  %vm781_vm12 = vweird.f32 %v973_v38 }
 0x5eb   :  { %v773_v44 = vsel %vm770_vm11, %v772_v41, %v768_v42  ;;  %vm782_vm14 = vmor %vm780_vm13, %vm781_vm12 }
 0x5ec   :  { %v799_v48 = vmul.f32 %v797_v37, %v773_v44  ;;  %v777_v1 = vsub.f32 1.0, %v776_v43 }
 0x5ee   :  { %v801_v51 = vadd.f32 %v799_v48, %v792_v45  ;;  %v778_v52 = vmul.f32 %v973_v38, %v777_v1 }
 0x5f0   :  { %908 = vst.msk [vmem:[%s1548_s3 + $0x50] sm:$0xff] %vm47_vm0, %v801_v51  ;;  %v779_v55 = vadd.f32 %v973_v38, %v778_v52 }
 0x5f2   :  { %v783_v58 = vsel %vm782_vm14, %v973_v38, %v779_v55 }
 0x5f3   :  { %v788_v59 = vsel %vm785_vm15, %v787_v39, %v783_v58 }
 0x5f4   :  { %v800_v56 = vmul.f32 %v798_v47, %v788_v59 }
 0x5f6   :  { %v802_v63 = vadd.f32 %v800_v56, %v793_v54 }
 0x5f8   :  { %909 = vst.msk [vmem:[%s1548_s3 + $0x58] sm:$0xff] %vm47_vm0, %v802_v63 }
 0x646   :  { %v807_v28 = vpop.xlane.xlu2 %806 }
 0x647   :  { %v811_v60 = vmul.f32 0.1, %v807_v28 }
 0x649   :  { %v813_v61 = vadd.f32 %v811_v60, %v1493_v4 }
 0x64b   :  { %910 = vst.msk [vmem:[%s1549_s4 + $0x50] sm:$0xff] %vm50_vm2, %v813_v61 }
 0x64e   :  { %v810_v5 = vpop.xlane.xlu0 %809 }
 0x64f   :  { %v812_v0 = vmul.f32 0.1, %v810_v5 }
 0x651   :  { %v814_v2 = vadd.f32 %v812_v0, %v1501_v57 }
 0x653   :  { %911 = vst.msk [vmem:[%s1549_s4 + $0x58] sm:$0xff] %vm50_vm2, %v814_v2 }

</bundles_post_ra>
